<compile_context>
chip_gen: v5e
topology: v5e:2x2
jax: 0.10.0
libtpu: 0.0.40
codegen_flags: <defaults>
</compile_context>

<pallas_src>
import functools

import jax
import jax.numpy as jnp
from jax import lax
from jax.experimental import pallas as pl
from jax.experimental.pallas import tpu as pltpu

_LANE = 128  # vreg lane width (last dim)


def _round_up(x, m):
    return ((x + m - 1) // m) * m


def _sublane_multiple(dtype):
    # f32 vreg holds 8 sublanes; bf16 packs 2 rows per sublane -> pad batch to 16.
    return 16 if jnp.dtype(dtype) == jnp.dtype(jnp.bfloat16) else 8


def encoder_fc_kernel(x_ref, wih_ref, bcat_ref, whh_ref, wdec_ref, bdec_ref,
                      out_ref, pre_ref):
    # x_ref:    (seq*batch_pad, in_pad)   all tokens, time-major, mxu dtype
    # wih_ref:  (in_pad, h_pad)           input->hidden weight, mxu dtype
    # bcat_ref: (1, h_pad)                b_ih + b_hh, f32
    # whh_ref:  (h_pad, h_pad)            hidden->hidden weight, mxu dtype
    # wdec_ref: (h_pad, out_pad)          decoder weight, mxu dtype
    # bdec_ref: (1, out_pad)              decoder bias, f32
    # out_ref:  (batch_pad, out_pad)      prediction, f32
    # pre_ref:  (seq*batch_pad, h_pad)    f32 VMEM scratch for input projections
    total, _ = x_ref.shape
    batch, out_pad = out_ref.shape
    h_pad = whh_ref.shape[1]
    seq = total // batch

    # (1) Bulk input projection, off the serial chain: a single well-shaped MXU
    #     push over all tokens.  Result parked in VMEM scratch so it does not
    #     pin vregs across the unrolled recurrence.  Bias broadcast happens once.
    pre_ref[...] = (
        jnp.dot(x_ref[...], wih_ref[...], preferred_element_type=jnp.float32)
        + bcat_ref[...])

    # (2) Serial recurrence: only h @ W_hh is on the dependency chain.
    #     W_hh is re-read from VMEM each step (vld slots are free under an
    #     MXU-latency-bound loop) instead of being held live in vregs.
    def step(t, h):
        row = pl.multiple_of(t * batch, batch)
        p_t = pre_ref[pl.ds(row, batch), :]                       # (batch, h_pad) f32
        hh = jnp.dot(h.astype(whh_ref.dtype), whh_ref[...],
                     preferred_element_type=jnp.float32)
        return jnp.tanh(p_t + hh)                                 # carried h stays f32

    h0 = jnp.zeros((batch, h_pad), jnp.float32)
    # Short static trip count -> fully unroll for the LLO scheduler.
    h_last = lax.fori_loop(0, seq, step, h0, unroll=True)

    # (3) Decoder: weight / bias touched only after the loop (no vreg pinning).
    pred = jnp.dot(h_last.astype(wdec_ref.dtype), wdec_ref[...],
                   preferred_element_type=jnp.float32) + bdec_ref[...]
    out_ref[...] = pred.astype(out_ref.dtype)


def prepare_encoder_fc_params(w_ih, b_ih, w_hh, b_hh, w_dec, b_dec,
                              *, mxu_dtype=jnp.bfloat16):
    """One-time parameter prep (padding / bias fusion / MXU dtype cast).

    Hoisted out of the per-call path so the forward pass launches no XLA
    pad/concat/cast ops besides the cheap token padding.
    Weights are expected pre-transposed to [in, out] layout.
    Padded rows/cols are zero, so padded hidden/output lanes stay exactly zero.
    """
    in_dim, h_dim = w_ih.shape
    out_dim = w_dec.shape[1]
    in_pad = _round_up(in_dim, _LANE)
    h_pad = _round_up(h_dim, _LANE)
    out_pad = _round_up(out_dim, _LANE)
    f32 = jnp.float32

    w_ih_p = jnp.zeros((in_pad, h_pad), f32).at[:in_dim, :h_dim].set(w_ih)
    w_hh_p = jnp.zeros((h_pad, h_pad), f32).at[:h_dim, :h_dim].set(w_hh)
    w_dec_p = jnp.zeros((h_pad, out_pad), f32).at[:h_dim, :out_dim].set(w_dec)
    b_cat_p = jnp.zeros((1, h_pad), f32).at[:, :h_dim].set(
        (b_ih + b_hh).reshape(1, h_dim))
    b_dec_p = jnp.zeros((1, out_pad), f32).at[:, :out_dim].set(
        b_dec.reshape(1, out_dim))

    # MXU operands may be narrowed (bf16 single-pass); biases stay f32.
    w_ih_p = jax.device_put(w_ih_p.astype(mxu_dtype))
    w_hh_p = jax.device_put(w_hh_p.astype(mxu_dtype))
    w_dec_p = jax.device_put(w_dec_p.astype(mxu_dtype))
    return (w_ih_p, b_cat_p, w_hh_p, w_dec_p, b_dec_p)


@functools.partial(jax.jit, static_argnames=("out_dim",))
def encoder_fc_forward(tokens, w_ih_p, b_cat_p, w_hh_p, w_dec_p, b_dec_p,
                       *, out_dim):
    """tokens: (seq, batch, in_dim); params from prepare_encoder_fc_params."""
    seq, batch, in_dim = tokens.shape
    in_pad, h_pad = w_ih_p.shape
    out_pad = w_dec_p.shape[1]
    mxu_dtype = w_ih_p.dtype
    batch_pad = _round_up(batch, _sublane_multiple(mxu_dtype))

    # Only the data-dependent token padding remains on the per-call path.
    tok_p = jnp.zeros((seq, batch_pad, in_pad), mxu_dtype)
    tok_p = tok_p.at[:, :batch, :in_dim].set(tokens.astype(mxu_dtype))
    tok_p = tok_p.reshape(seq * batch_pad, in_pad)   # time-major 2D slab

    # Advisory cost estimate so XLA schedules neighbours around this tiny call.
    flops = (2 * seq * batch_pad * (in_pad + h_pad) * h_pad
             + 2 * batch_pad * h_pad * out_pad)
    transcendentals = seq * batch_pad * h_pad
    bytes_accessed = (tok_p.size * tok_p.dtype.itemsize
                      + w_ih_p.size * w_ih_p.dtype.itemsize
                      + w_hh_p.size * w_hh_p.dtype.itemsize
                      + w_dec_p.size * w_dec_p.dtype.itemsize
                      + b_cat_p.size * b_cat_p.dtype.itemsize
                      + b_dec_p.size * b_dec_p.dtype.itemsize
                      + batch_pad * out_pad * 4)

    out = pl.pallas_call(
        encoder_fc_kernel,
        out_shape=jax.ShapeDtypeStruct((batch_pad, out_pad), jnp.float32),
        grid_spec=pltpu.PrefetchScalarGridSpec(
            num_scalar_prefetch=0,
            grid=(1,),   # recurrence lives in-kernel; seq=8 fits VMEM easily
            in_specs=[
                pl.BlockSpec((seq * batch_pad, in_pad), lambda i: (0, 0)),
                pl.BlockSpec((in_pad, h_pad), lambda i: (0, 0)),
                pl.BlockSpec((1, h_pad), lambda i: (0, 0)),
                pl.BlockSpec((h_pad, h_pad), lambda i: (0, 0)),
                pl.BlockSpec((h_pad, out_pad), lambda i: (0, 0)),
                pl.BlockSpec((1, out_pad), lambda i: (0, 0)),
            ],
            out_specs=pl.BlockSpec((batch_pad, out_pad), lambda i: (0, 0)),
            scratch_shapes=[
                pltpu.VMEM((seq * batch_pad, h_pad), jnp.float32),
            ],
        ),
        compiler_params=pltpu.CompilerParams(
            dimension_semantics=("arbitrary",)),
        cost_estimate=pl.CostEstimate(flops=flops,
                                      transcendentals=transcendentals,
                                      bytes_accessed=bytes_accessed),
    )(tok_p, w_ih_p, b_cat_p, w_hh_p, w_dec_p, b_dec_p)

    return out[:batch, :out_dim]


def encoder_fc_reference(tokens, w_ih, b_ih, w_hh, b_hh, w_dec, b_dec):
    # pure-JAX f32 reference of the same recurrence.
    def step(h, x):
        h_new = jnp.tanh(x @ w_ih + b_ih + h @ w_hh + b_hh)
        return h_new, None
    h0 = jnp.zeros((tokens.shape[1], w_ih.shape[1]), jnp.float32)
    h_last, _ = jax.lax.scan(step, h0, tokens)
    return h_last @ w_dec + b_dec


if __name__ == "__main__":
    key = jax.random.PRNGKey(0)
    seq, batch, in_dim, h_dim, out_dim = 8, 8, 32, 32, 16

    ks = jax.random.split(key, 7)
    tokens = jax.random.normal(ks[0], (seq, batch, in_dim), jnp.float32)
    w_ih = jax.random.normal(ks[1], (in_dim, h_dim), jnp.float32) * 0.1
    b_ih = jax.random.normal(ks[2], (1, h_dim), jnp.float32) * 0.1
    w_hh = jax.random.normal(ks[3], (h_dim, h_dim), jnp.float32) * 0.1
    b_hh = jax.random.normal(ks[4], (1, h_dim), jnp.float32) * 0.1
    w_dec = jax.random.normal(ks[5], (h_dim, out_dim), jnp.float32) * 0.1
    b_dec = jax.random.normal(ks[6], (1, out_dim), jnp.float32) * 0.1

    ref = encoder_fc_reference(tokens, w_ih, b_ih, w_hh, b_hh, w_dec, b_dec)

    # f32 MXU path: tight check against the f32 reference.
    params_f32 = prepare_encoder_fc_params(
        w_ih, b_ih, w_hh, b_hh, w_dec, b_dec, mxu_dtype=jnp.float32)
    out_f32 = jax.block_until_ready(
        encoder_fc_forward(tokens, *params_f32, out_dim=out_dim))
    assert out_f32.shape == (batch, out_dim)
    assert jnp.allclose(out_f32, ref, atol=5e-4, rtol=5e-4), \
        "f32 path mismatch vs reference"

    # Default bf16-MXU path (f32 accumulation / bias / tanh / carried h):
    # operands are bf16-quantized, so use a correspondingly looser tolerance.
    params_bf16 = prepare_encoder_fc_params(
        w_ih, b_ih, w_hh, b_hh, w_dec, b_dec, mxu_dtype=jnp.bfloat16)
    out_bf16 = jax.block_until_ready(
        encoder_fc_forward(tokens, *params_bf16, out_dim=out_dim))
    assert out_bf16.shape == (batch, out_dim)
    assert jnp.allclose(out_bf16, ref, atol=2e-2, rtol=2e-2), \
        "bf16 path mismatch vs reference"

    print("KERNEL_OK")
</pallas_src>

<mosaic_0001>
module attributes {stable_mosaic.version = 11 : i64} {
  func.func @encoder_fc_kernel(%arg0: i32, %arg1: memref<64x128xf32, #tpu.memory_space<vmem>>, %arg2: memref<128x128xf32, #tpu.memory_space<vmem>>, %arg3: memref<1x128xf32, #tpu.memory_space<vmem>>, %arg4: memref<128x128xf32, #tpu.memory_space<vmem>>, %arg5: memref<128x128xf32, #tpu.memory_space<vmem>>, %arg6: memref<1x128xf32, #tpu.memory_space<vmem>>, %arg7: memref<8x128xf32, #tpu.memory_space<vmem>>, %arg8: memref<64x128xf32, #tpu.memory_space<vmem>>) attributes {dimension_semantics = [#tpu.dimension_semantics<arbitrary>], iteration_bounds = array<i64: 1>, scalar_prefetch = 0 : i64, scratch_operands = 1 : i64, tpu.core_type = #tpu.core_type<tc>, window_params = [{pipeline_mode = #tpu.pipeline_mode<synchronous>, transform_indices = @transform_0, window_bounds = array<i64: 64, 128>}, {pipeline_mode = #tpu.pipeline_mode<synchronous>, transform_indices = @transform_1, window_bounds = array<i64: 128, 128>}, {pipeline_mode = #tpu.pipeline_mode<synchronous>, transform_indices = @transform_2, window_bounds = array<i64: 1, 128>}, {pipeline_mode = #tpu.pipeline_mode<synchronous>, transform_indices = @transform_3, window_bounds = array<i64: 128, 128>}, {pipeline_mode = #tpu.pipeline_mode<synchronous>, transform_indices = @transform_4, window_bounds = array<i64: 128, 128>}, {pipeline_mode = #tpu.pipeline_mode<synchronous>, transform_indices = @transform_5, window_bounds = array<i64: 1, 128>}, {pipeline_mode = #tpu.pipeline_mode<synchronous>, transform_indices = @transform_6, window_bounds = array<i64: 8, 128>}]} {
    %c0 = arith.constant 0 : index
    %c0_0 = arith.constant 0 : index
    %0 = vector.load %arg1[%c0, %c0_0] : memref<64x128xf32, #tpu.memory_space<vmem>>, vector<64x128xf32>
    %c0_1 = arith.constant 0 : index
    %c0_2 = arith.constant 0 : index
    %1 = vector.load %arg2[%c0_1, %c0_2] : memref<128x128xf32, #tpu.memory_space<vmem>>, vector<128x128xf32>
    %cst = arith.constant dense<0.000000e+00> : vector<64x128xf32>
    %2 = tpu.matmul %0, %1, %cst {dimension_numbers = #tpu.dot_dimension_numbers<[1], [0], [0], [1], [0, 0, 1, 1], [], []>} : vector<64x128xf32>, vector<128x128xf32>, vector<64x128xf32> -> vector<64x128xf32>
    %c0_3 = arith.constant 0 : index
    %c0_4 = arith.constant 0 : index
    %3 = vector.load %arg3[%c0_3, %c0_4] : memref<1x128xf32, #tpu.memory_space<vmem>>, vector<1x128xf32>
    %4 = vector.broadcast %3 : vector<1x128xf32> to vector<64x128xf32>
    %5 = arith.addf %2, %4 : vector<64x128xf32>
    %c0_5 = arith.constant 0 : index
    %c0_6 = arith.constant 0 : index
    %6 = vector.load %arg8[%c0_5, %c0_6] : memref<64x128xf32, #tpu.memory_space<vmem>>, vector<64x128xf32>
    tpu.vector_store %arg8[%c0_5, %c0_6], %5 {strides = array<i32>} : memref<64x128xf32, #tpu.memory_space<vmem>>, vector<64x128xf32>,
    %cst_7 = arith.constant 0.000000e+00 : f32
    %7 = vector.broadcast %cst_7 : f32 to vector<8x128xf32>
    %c0_i32 = arith.constant 0 : i32
    %c8_i32 = arith.constant 8 : i32
    %8 = arith.muli %c0_i32, %c8_i32 : i32
    %9 = tpu.assume_multiple %8, 8 : i32
    %10 = arith.index_cast %9 : i32 to index
    %c0_8 = arith.constant 0 : index
    %11 = vector.load %arg8[%10, %c0_8] : memref<64x128xf32, #tpu.memory_space<vmem>>, vector<8x128xf32>
    %c0_9 = arith.constant 0 : index
    %c0_10 = arith.constant 0 : index
    %12 = vector.load %arg4[%c0_9, %c0_10] : memref<128x128xf32, #tpu.memory_space<vmem>>, vector<128x128xf32>
    %cst_11 = arith.constant dense<0.000000e+00> : vector<8x128xf32>
    %13 = tpu.matmul %7, %12, %cst_11 {dimension_numbers = #tpu.dot_dimension_numbers<[1], [0], [0], [1], [0, 0, 1, 1], [], []>} : vector<8x128xf32>, vector<128x128xf32>, vector<8x128xf32> -> vector<8x128xf32>
    %14 = arith.addf %11, %13 : vector<8x128xf32>
    %15 = math.tanh %14 : vector<8x128xf32>
    %c1_i32 = arith.constant 1 : i32
    %c8_i32_12 = arith.constant 8 : i32
    %16 = arith.muli %c1_i32, %c8_i32_12 : i32
    %17 = tpu.assume_multiple %16, 8 : i32
    %18 = arith.index_cast %17 : i32 to index
    %c0_13 = arith.constant 0 : index
    %19 = vector.load %arg8[%18, %c0_13] : memref<64x128xf32, #tpu.memory_space<vmem>>, vector<8x128xf32>
    %c0_14 = arith.constant 0 : index
    %c0_15 = arith.constant 0 : index
    %20 = vector.load %arg4[%c0_14, %c0_15] : memref<128x128xf32, #tpu.memory_space<vmem>>, vector<128x128xf32>
    %cst_16 = arith.constant dense<0.000000e+00> : vector<8x128xf32>
    %21 = tpu.matmul %15, %20, %cst_16 {dimension_numbers = #tpu.dot_dimension_numbers<[1], [0], [0], [1], [0, 0, 1, 1], [], []>} : vector<8x128xf32>, vector<128x128xf32>, vector<8x128xf32> -> vector<8x128xf32>
    %22 = arith.addf %19, %21 : vector<8x128xf32>
    %23 = math.tanh %22 : vector<8x128xf32>
    %c2_i32 = arith.constant 2 : i32
    %c8_i32_17 = arith.constant 8 : i32
    %24 = arith.muli %c2_i32, %c8_i32_17 : i32
    %25 = tpu.assume_multiple %24, 8 : i32
    %26 = arith.index_cast %25 : i32 to index
    %c0_18 = arith.constant 0 : index
    %27 = vector.load %arg8[%26, %c0_18] : memref<64x128xf32, #tpu.memory_space<vmem>>, vector<8x128xf32>
    %c0_19 = arith.constant 0 : index
    %c0_20 = arith.constant 0 : index
    %28 = vector.load %arg4[%c0_19, %c0_20] : memref<128x128xf32, #tpu.memory_space<vmem>>, vector<128x128xf32>
    %cst_21 = arith.constant dense<0.000000e+00> : vector<8x128xf32>
    %29 = tpu.matmul %23, %28, %cst_21 {dimension_numbers = #tpu.dot_dimension_numbers<[1], [0], [0], [1], [0, 0, 1, 1], [], []>} : vector<8x128xf32>, vector<128x128xf32>, vector<8x128xf32> -> vector<8x128xf32>
    %30 = arith.addf %27, %29 : vector<8x128xf32>
    %31 = math.tanh %30 : vector<8x128xf32>
    %c3_i32 = arith.constant 3 : i32
    %c8_i32_22 = arith.constant 8 : i32
    %32 = arith.muli %c3_i32, %c8_i32_22 : i32
    %33 = tpu.assume_multiple %32, 8 : i32
    %34 = arith.index_cast %33 : i32 to index
    %c0_23 = arith.constant 0 : index
    %35 = vector.load %arg8[%34, %c0_23] : memref<64x128xf32, #tpu.memory_space<vmem>>, vector<8x128xf32>
    %c0_24 = arith.constant 0 : index
    %c0_25 = arith.constant 0 : index
    %36 = vector.load %arg4[%c0_24, %c0_25] : memref<128x128xf32, #tpu.memory_space<vmem>>, vector<128x128xf32>
    %cst_26 = arith.constant dense<0.000000e+00> : vector<8x128xf32>
    %37 = tpu.matmul %31, %36, %cst_26 {dimension_numbers = #tpu.dot_dimension_numbers<[1], [0], [0], [1], [0, 0, 1, 1], [], []>} : vector<8x128xf32>, vector<128x128xf32>, vector<8x128xf32> -> vector<8x128xf32>
    %38 = arith.addf %35, %37 : vector<8x128xf32>
    %39 = math.tanh %38 : vector<8x128xf32>
    %c4_i32 = arith.constant 4 : i32
    %c8_i32_27 = arith.constant 8 : i32
    %40 = arith.muli %c4_i32, %c8_i32_27 : i32
    %41 = tpu.assume_multiple %40, 8 : i32
    %42 = arith.index_cast %41 : i32 to index
    %c0_28 = arith.constant 0 : index
    %43 = vector.load %arg8[%42, %c0_28] : memref<64x128xf32, #tpu.memory_space<vmem>>, vector<8x128xf32>
    %c0_29 = arith.constant 0 : index
    %c0_30 = arith.constant 0 : index
    %44 = vector.load %arg4[%c0_29, %c0_30] : memref<128x128xf32, #tpu.memory_space<vmem>>, vector<128x128xf32>
    %cst_31 = arith.constant dense<0.000000e+00> : vector<8x128xf32>
    %45 = tpu.matmul %39, %44, %cst_31 {dimension_numbers = #tpu.dot_dimension_numbers<[1], [0], [0], [1], [0, 0, 1, 1], [], []>} : vector<8x128xf32>, vector<128x128xf32>, vector<8x128xf32> -> vector<8x128xf32>
    %46 = arith.addf %43, %45 : vector<8x128xf32>
    %47 = math.tanh %46 : vector<8x128xf32>
    %c5_i32 = arith.constant 5 : i32
    %c8_i32_32 = arith.constant 8 : i32
    %48 = arith.muli %c5_i32, %c8_i32_32 : i32
    %49 = tpu.assume_multiple %48, 8 : i32
    %50 = arith.index_cast %49 : i32 to index
    %c0_33 = arith.constant 0 : index
    %51 = vector.load %arg8[%50, %c0_33] : memref<64x128xf32, #tpu.memory_space<vmem>>, vector<8x128xf32>
    %c0_34 = arith.constant 0 : index
    %c0_35 = arith.constant 0 : index
    %52 = vector.load %arg4[%c0_34, %c0_35] : memref<128x128xf32, #tpu.memory_space<vmem>>, vector<128x128xf32>
    %cst_36 = arith.constant dense<0.000000e+00> : vector<8x128xf32>
    %53 = tpu.matmul %47, %52, %cst_36 {dimension_numbers = #tpu.dot_dimension_numbers<[1], [0], [0], [1], [0, 0, 1, 1], [], []>} : vector<8x128xf32>, vector<128x128xf32>, vector<8x128xf32> -> vector<8x128xf32>
    %54 = arith.addf %51, %53 : vector<8x128xf32>
    %55 = math.tanh %54 : vector<8x128xf32>
    %c6_i32 = arith.constant 6 : i32
    %c8_i32_37 = arith.constant 8 : i32
    %56 = arith.muli %c6_i32, %c8_i32_37 : i32
    %57 = tpu.assume_multiple %56, 8 : i32
    %58 = arith.index_cast %57 : i32 to index
    %c0_38 = arith.constant 0 : index
    %59 = vector.load %arg8[%58, %c0_38] : memref<64x128xf32, #tpu.memory_space<vmem>>, vector<8x128xf32>
    %c0_39 = arith.constant 0 : index
    %c0_40 = arith.constant 0 : index
    %60 = vector.load %arg4[%c0_39, %c0_40] : memref<128x128xf32, #tpu.memory_space<vmem>>, vector<128x128xf32>
    %cst_41 = arith.constant dense<0.000000e+00> : vector<8x128xf32>
    %61 = tpu.matmul %55, %60, %cst_41 {dimension_numbers = #tpu.dot_dimension_numbers<[1], [0], [0], [1], [0, 0, 1, 1], [], []>} : vector<8x128xf32>, vector<128x128xf32>, vector<8x128xf32> -> vector<8x128xf32>
    %62 = arith.addf %59, %61 : vector<8x128xf32>
    %63 = math.tanh %62 : vector<8x128xf32>
    %c7_i32 = arith.constant 7 : i32
    %c8_i32_42 = arith.constant 8 : i32
    %64 = arith.muli %c7_i32, %c8_i32_42 : i32
    %65 = tpu.assume_multiple %64, 8 : i32
    %66 = arith.index_cast %65 : i32 to index
    %c0_43 = arith.constant 0 : index
    %67 = vector.load %arg8[%66, %c0_43] : memref<64x128xf32, #tpu.memory_space<vmem>>, vector<8x128xf32>
    %c0_44 = arith.constant 0 : index
    %c0_45 = arith.constant 0 : index
    %68 = vector.load %arg4[%c0_44, %c0_45] : memref<128x128xf32, #tpu.memory_space<vmem>>, vector<128x128xf32>
    %cst_46 = arith.constant dense<0.000000e+00> : vector<8x128xf32>
    %69 = tpu.matmul %63, %68, %cst_46 {dimension_numbers = #tpu.dot_dimension_numbers<[1], [0], [0], [1], [0, 0, 1, 1], [], []>} : vector<8x128xf32>, vector<128x128xf32>, vector<8x128xf32> -> vector<8x128xf32>
    %70 = arith.addf %67, %69 : vector<8x128xf32>
    %71 = math.tanh %70 : vector<8x128xf32>
    %c8_i32_47 = arith.constant 8 : i32
    %c0_48 = arith.constant 0 : index
    %c0_49 = arith.constant 0 : index
    %72 = vector.load %arg5[%c0_48, %c0_49] : memref<128x128xf32, #tpu.memory_space<vmem>>, vector<128x128xf32>
    %cst_50 = arith.constant dense<0.000000e+00> : vector<8x128xf32>
    %73 = tpu.matmul %71, %72, %cst_50 {dimension_numbers = #tpu.dot_dimension_numbers<[1], [0], [0], [1], [0, 0, 1, 1], [], []>} : vector<8x128xf32>, vector<128x128xf32>, vector<8x128xf32> -> vector<8x128xf32>
    %c0_51 = arith.constant 0 : index
    %c0_52 = arith.constant 0 : index
    %74 = vector.load %arg6[%c0_51, %c0_52] : memref<1x128xf32, #tpu.memory_space<vmem>>, vector<1x128xf32>
    %75 = vector.broadcast %74 : vector<1x128xf32> to vector<8x128xf32>
    %76 = arith.addf %73, %75 : vector<8x128xf32>
    %c0_53 = arith.constant 0 : index
    %c0_54 = arith.constant 0 : index
    %77 = vector.load %arg7[%c0_53, %c0_54] : memref<8x128xf32, #tpu.memory_space<vmem>>, vector<8x128xf32>
    tpu.vector_store %arg7[%c0_53, %c0_54], %76 {strides = array<i32>} : memref<8x128xf32, #tpu.memory_space<vmem>>, vector<8x128xf32>,
    return
  }
  func.func @transform_0(%arg0: i32) -> (i32, i32) {
    %c0_i32 = arith.constant 0 : i32
    %c0_i32_0 = arith.constant 0 : i32
    %c0_i32_1 = arith.constant 0 : i32
    return %c0_i32, %c0_i32_0 : i32, i32
  }
  func.func @transform_1(%arg0: i32) -> (i32, i32) {
    %c0_i32 = arith.constant 0 : i32
    %c0_i32_0 = arith.constant 0 : i32
    %c0_i32_1 = arith.constant 0 : i32
    return %c0_i32, %c0_i32_0 : i32, i32
  }
  func.func @transform_2(%arg0: i32) -> (i32, i32) {
    %c0_i32 = arith.constant 0 : i32
    %c0_i32_0 = arith.constant 0 : i32
    %c0_i32_1 = arith.constant 0 : i32
    return %c0_i32, %c0_i32_0 : i32, i32
  }
  func.func @transform_3(%arg0: i32) -> (i32, i32) {
    %c0_i32 = arith.constant 0 : i32
    %c0_i32_0 = arith.constant 0 : i32
    %c0_i32_1 = arith.constant 0 : i32
    return %c0_i32, %c0_i32_0 : i32, i32
  }
  func.func @transform_4(%arg0: i32) -> (i32, i32) {
    %c0_i32 = arith.constant 0 : i32
    %c0_i32_0 = arith.constant 0 : i32
    %c0_i32_1 = arith.constant 0 : i32
    return %c0_i32, %c0_i32_0 : i32, i32
  }
  func.func @transform_5(%arg0: i32) -> (i32, i32) {
    %c0_i32 = arith.constant 0 : i32
    %c0_i32_0 = arith.constant 0 : i32
    %c0_i32_1 = arith.constant 0 : i32
    return %c0_i32, %c0_i32_0 : i32, i32
  }
  func.func @transform_6(%arg0: i32) -> (i32, i32) {
    %c0_i32 = arith.constant 0 : i32
    %c0_i32_0 = arith.constant 0 : i32
    %c0_i32_1 = arith.constant 0 : i32
    return %c0_i32, %c0_i32_0 : i32, i32
  }
}

</mosaic_0001>

<bundles_post_ra>
// kernel: encoder_fc_forward.1
= control target key start
LH: loop header
LB: loop body
LE: loop exit
PB: predicated region body
PF: predicated region fallthrough
CT: control target
= control target key end

     0   :  { %11 = vsyncpa [#allocation4], 0  ;;  %s799_s0 = inlined_call_operand.vmem [shape: f32[64,128], index: 0, kind: input, shape index: {}]   ;;  %s800_s1 = inlined_call_operand.vmem [shape: f32[128,128], index: 1, kind: input, shape index: {}]   ;;  %s801_s2 = inlined_call_operand.vmem [shape: f32[1,128], index: 2, kind: input, shape index: {}]   ;;  %s802_s3 = inlined_call_operand.hbm [shape: f32[128,128], index: 3, kind: input, shape index: {}]   ;;  %s803_s4 = inlined_call_operand.hbm [shape: f32[128,128], index: 4, kind: input, shape index: {}]   ;;  %s804_s5 = inlined_call_operand.vmem [shape: f32[1,128], index: 5, kind: input, shape index: {}]   ;;  %s805_s6 = inlined_call_operand.hbm [shape: f32[8,128], index: 6, kind: output, shape index: {}]  }
   0x1   :  { %12 = vsyncpa [#allocation7], 0 }
   0x2   :  { %13 = vsyncpa [#allocation5], 0  ;;  %s24_s23 = sshll.u32 %s802_s3, 4  ;;  %s501_s24 = smov [#allocation3]   ;;  %s25_s23 = int_to_ptr.hbm [resolvable:$true] %s24_s23 }
   0x3   :  { %s26_s25 = sshll.u32 %s501_s24, 4  ;;  %s37_s28 = sshll.u32 %s803_s4, 4  ;;  %s27_s25 = int_to_ptr.vmem [resolvable:$true] %s26_s25  ;;  %s38_s28 = int_to_ptr.hbm [resolvable:$true] %s37_s28 }
   0x4   :  { %s502_s29 = smov 128   ;;  %s503_s30 = smov 8  }
   0x5   :  { %32 = dma.hbm_to_vmem [thread:$0]  %s25_s23, 2048, %s27_s25, [#allocation4], %s502_s29, %s502_s29, %s503_s30  }
   0x6   :  { %s504_s7 = smov [#allocation6]  }
   0x7   :  { %s39_s8 = sshll.u32 %s504_s7, 4  ;;  %s40_s8 = int_to_ptr.vmem [resolvable:$true] %s39_s8 }
   0x8   :  { %45 = dma.hbm_to_vmem [thread:$0]  %s38_s28, 2048, %s40_s8, [#allocation7], %s502_s29, %s502_s29, %s503_s30  }
   0x9   :  { %495 = dma.done.wait [#allocation4], 2048  }
   0xa   :  { %496 = vsyncadd [#allocation4], 4294965248 }
   0xb   :  { %497 = dma.done.wait [#allocation7], 2048  }
   0xc   :  { %498 = vsyncadd [#allocation7], 4294965248  ;;  %v79_v0 = vld [vmem:[%s800_s1 + $0x78] sm:$0xff]  ;;  %v78_v1 = vld [vmem:[%s800_s1 + $0x70] sm:$0xff]  ;;  %v505_v33 = vmov 0.0   ;;  %s506_s30 = smov [#allocation8]  }
   0xd   :  { %v554_v2 = vld [vmem:[#allocation3 + $0x78] sm:$0xff]  ;;  %84 = vmatpush.msra.mxu0 %v79_v0  ;;  %v557_v3 = vld [vmem:[#allocation3 + $0x70] sm:$0xff]  ;;  %v77_v4 = vld [vmem:[%s800_s1 + $0x68] sm:$0xff]  ;;  %s386_s7 = sshll.u32 %s506_s30, 4  ;;  %s388_s9 = sshll.u32 %s805_s6, 4  ;;  %s387_s7 = int_to_ptr.vmem [resolvable:$true] %s386_s7  ;;  %s389_s9 = int_to_ptr.hbm [resolvable:$true] %s388_s9 }
   0xe   :  { %150 = vmatpush.msra.mxu1 %v554_v2  ;;  %v562_v5 = vld [vmem:[#allocation3 + $0x68] sm:$0xff]  ;;  %174 = vmatpush.msra.mxu2 %v554_v2  ;;  %v76_v6 = vld [vmem:[%s800_s1 + $0x60] sm:$0xff]  ;;  %v75_v8 = vld [vmem:[%s800_s1 + $0x58] sm:$0xff] }
   0xf   :  { %198 = vmatpush.msra.mxu3 %v554_v2  ;;  %85 = vmatpush.msra.mxu0 %v78_v1  ;;  %v570_v7 = vld [vmem:[#allocation3 + $0x60] sm:$0xff]  ;;  %v578_v9 = vld [vmem:[#allocation3 + $0x58] sm:$0xff]  ;;  %v74_v10 = vld [vmem:[%s800_s1 + $0x50] sm:$0xff] }
  0x10   :  { %151 = vmatpush.msra.mxu1 %v557_v3  ;;  %175 = vmatpush.msra.mxu2 %v557_v3  ;;  %v586_v11 = vld [vmem:[#allocation3 + $0x50] sm:$0xff]  ;;  %v73_v12 = vld [vmem:[%s800_s1 + $0x48] sm:$0xff]  ;;  %v72_v14 = vld [vmem:[%s800_s1 + $0x40] sm:$0xff] }
  0x11   :  { %199 = vmatpush.msra.mxu3 %v557_v3  ;;  %86 = vmatpush.msra.mxu0 %v77_v4  ;;  %v594_v13 = vld [vmem:[#allocation3 + $0x48] sm:$0xff]  ;;  %v602_v15 = vld [vmem:[#allocation3 + $0x40] sm:$0xff]  ;;  %v71_v16 = vld [vmem:[%s800_s1 + $0x38] sm:$0xff] }
  0x12   :  { %152 = vmatpush.msra.mxu1 %v562_v5  ;;  %176 = vmatpush.msra.mxu2 %v562_v5  ;;  %v610_v17 = vld [vmem:[#allocation3 + $0x38] sm:$0xff]  ;;  %v70_v18 = vld [vmem:[%s800_s1 + $0x30] sm:$0xff]  ;;  %v69_v20 = vld [vmem:[%s800_s1 + $0x28] sm:$0xff] }
  0x13   :  { %200 = vmatpush.msra.mxu3 %v562_v5  ;;  %87 = vmatpush.msra.mxu0 %v76_v6  ;;  %v618_v19 = vld [vmem:[#allocation3 + $0x30] sm:$0xff]  ;;  %v626_v21 = vld [vmem:[#allocation3 + $0x28] sm:$0xff]  ;;  %v68_v22 = vld [vmem:[%s800_s1 + $0x20] sm:$0xff] }
  0x14   :  { %153 = vmatpush.msra.mxu1 %v570_v7  ;;  %177 = vmatpush.msra.mxu2 %v570_v7  ;;  %v634_v23 = vld [vmem:[#allocation3 + $0x20] sm:$0xff]  ;;  %v67_v24 = vld [vmem:[%s800_s1 + $0x18] sm:$0xff]  ;;  %v66_v26 = vld [vmem:[%s800_s1 + $0x10] sm:$0xff] }
  0x15   :  { %201 = vmatpush.msra.mxu3 %v570_v7  ;;  %88 = vmatpush.msra.mxu0 %v75_v8  ;;  %v642_v25 = vld [vmem:[#allocation3 + $0x18] sm:$0xff]  ;;  %v650_v27 = vld [vmem:[#allocation3 + $0x10] sm:$0xff]  ;;  %v65_v28 = vld [vmem:[%s800_s1 + $0x8] sm:$0xff] }
  0x16   :  { %154 = vmatpush.msra.mxu1 %v578_v9  ;;  %178 = vmatpush.msra.mxu2 %v578_v9  ;;  %v658_v29 = vld [vmem:[#allocation3 + $0x8] sm:$0xff]  ;;  %v64_v30 = vld [vmem:[%s800_s1] sm:$0xff]  ;;  %v58_v41 = vld [vmem:[%s799_s0 + $0x10] sm:$0xff] }
  0x17   :  { %202 = vmatpush.msra.mxu3 %v578_v9  ;;  %89 = vmatpush.msra.mxu0 %v74_v10  ;;  %v666_v31 = vld [vmem:[#allocation3] sm:$0xff]  ;;  %v57_v34 = vld [vmem:[%s799_s0 + $0x8] sm:$0xff]  ;;  %v59_v47 = vld [vmem:[%s799_s0 + $0x18] sm:$0xff] }
  0x18   :  { %155 = vmatpush.msra.mxu1 %v586_v11  ;;  %179 = vmatpush.msra.mxu2 %v586_v11  ;;  %v56_v32 = vld [vmem:[%s799_s0] sm:$0xff]  ;;  %v61_v59 = vld [vmem:[%s799_s0 + $0x28] sm:$0xff]  ;;  %v62_v60 = vld [vmem:[%s799_s0 + $0x30] sm:$0xff] }
  0x19   :  { %203 = vmatpush.msra.mxu3 %v586_v11  ;;  %90 = vmatpush.msra.mxu0 %v73_v12  ;;  %v765_v35 = vld [vmem:[%s801_s2] ss:$0 sm:$0xff]  ;;  %v355_v8 = vld [vmem:[#allocation6 + $0x78] sm:$0xff] }
  0x1a   :  { %156 = vmatpush.msra.mxu1 %v594_v13  ;;  %180 = vmatpush.msra.mxu2 %v594_v13  ;;  %v60_v53 = vld [vmem:[%s799_s0 + $0x20] sm:$0xff] }
  0x1b   :  { %204 = vmatpush.msra.mxu3 %v594_v13  ;;  %91 = vmatpush.msra.mxu0 %v72_v14  ;;  %v352_v12 = vld [vmem:[#allocation6 + $0x60] sm:$0xff]  ;;  %v350_v14 = vld [vmem:[#allocation6 + $0x50] sm:$0xff] }
  0x1c   :  { %157 = vmatpush.msra.mxu1 %v602_v15  ;;  %181 = vmatpush.msra.mxu2 %v602_v15 }
  0x1d   :  { %205 = vmatpush.msra.mxu3 %v602_v15  ;;  %92 = vmatpush.msra.mxu0 %v71_v16 }
  0x1e   :  { %158 = vmatpush.msra.mxu1 %v610_v17  ;;  %182 = vmatpush.msra.mxu2 %v610_v17 }
  0x1f   :  { %206 = vmatpush.msra.mxu3 %v610_v17  ;;  %93 = vmatpush.msra.mxu0 %v70_v18  ;;  %v347_v18 = vld [vmem:[#allocation6 + $0x38] sm:$0xff] }
  0x20   :  { %159 = vmatpush.msra.mxu1 %v618_v19  ;;  %183 = vmatpush.msra.mxu2 %v618_v19 }
  0x21   :  { %207 = vmatpush.msra.mxu3 %v618_v19  ;;  %94 = vmatpush.msra.mxu0 %v69_v20  ;;  %v345_v20 = vld [vmem:[#allocation6 + $0x28] sm:$0xff] }
  0x22   :  { %160 = vmatpush.msra.mxu1 %v626_v21  ;;  %184 = vmatpush.msra.mxu2 %v626_v21 }
  0x23   :  { %208 = vmatpush.msra.mxu3 %v626_v21  ;;  %95 = vmatpush.msra.mxu0 %v68_v22 }
  0x24   :  { %161 = vmatpush.msra.mxu1 %v634_v23  ;;  %185 = vmatpush.msra.mxu2 %v634_v23 }
  0x25   :  { %209 = vmatpush.msra.mxu3 %v634_v23  ;;  %96 = vmatpush.msra.mxu0 %v67_v24 }
  0x26   :  { %162 = vmatpush.msra.mxu1 %v642_v25  ;;  %186 = vmatpush.msra.mxu2 %v642_v25 }
  0x27   :  { %210 = vmatpush.msra.mxu3 %v642_v25  ;;  %97 = vmatpush.msra.mxu0 %v66_v26  ;;  %v343_v26 = vld [vmem:[#allocation6 + $0x18] sm:$0xff] }
  0x28   :  { %163 = vmatpush.msra.mxu1 %v650_v27  ;;  %187 = vmatpush.msra.mxu2 %v650_v27 }
  0x29   :  { %211 = vmatpush.msra.mxu3 %v650_v27  ;;  %98 = vmatpush.msra.mxu0 %v65_v28  ;;  %v341_v28 = vld [vmem:[#allocation6 + $0x8] sm:$0xff] }
  0x2a   :  { %164 = vmatpush.msra.mxu1 %v658_v29  ;;  %188 = vmatpush.msra.mxu2 %v658_v29 }
  0x2b   :  { %212 = vmatpush.msra.mxu3 %v658_v29  ;;  %99 = vmatpush.msra.mxu0 %v64_v30 }
  0x2c   :  { %165 = vmatpush.msra.mxu1 %v666_v31  ;;  %100 = vmatmul.f32.vlgmr.msra.gmra.mxu0 %v56_v32 }
  0x2d   :  { %166 = vmatmul.f32.vlgmr.msra.gmra.mxu1 %v505_v33  ;;  %189 = vmatpush.msra.mxu2 %v666_v31 }
  0x2e   :  { %213 = vmatpush.msra.mxu3 %v666_v31  ;;  %222 = vmatpush.msrb.mxu1 %v554_v2 }
  0x2f   :  { %246 = vmatpush.msrb.mxu2 %v554_v2  ;;  %294 = vmatpush.msrb.mxu0 %v554_v2 }
  0x30   :  { %270 = vmatpush.msrb.mxu3 %v554_v2  ;;  %223 = vmatpush.msrb.mxu1 %v557_v3 }
  0x31   :  { %247 = vmatpush.msrb.mxu2 %v557_v3  ;;  %295 = vmatpush.msrb.mxu0 %v557_v3 }
  0x32   :  { %271 = vmatpush.msrb.mxu3 %v557_v3  ;;  %224 = vmatpush.msrb.mxu1 %v562_v5 }
  0x33   :  { %248 = vmatpush.msrb.mxu2 %v562_v5  ;;  %296 = vmatpush.msrb.mxu0 %v562_v5 }
  0x34   :  { %272 = vmatpush.msrb.mxu3 %v562_v5  ;;  %225 = vmatpush.msrb.mxu1 %v570_v7 }
  0x35   :  { %249 = vmatpush.msrb.mxu2 %v570_v7  ;;  %297 = vmatpush.msrb.mxu0 %v570_v7 }
  0x36   :  { %273 = vmatpush.msrb.mxu3 %v570_v7  ;;  %226 = vmatpush.msrb.mxu1 %v578_v9 }
  0x37   :  { %250 = vmatpush.msrb.mxu2 %v578_v9  ;;  %298 = vmatpush.msrb.mxu0 %v578_v9 }
  0x38   :  { %274 = vmatpush.msrb.mxu3 %v578_v9  ;;  %227 = vmatpush.msrb.mxu1 %v586_v11 }
  0x39   :  { %251 = vmatpush.msrb.mxu2 %v586_v11  ;;  %299 = vmatpush.msrb.mxu0 %v586_v11 }
  0x3a   :  { %275 = vmatpush.msrb.mxu3 %v586_v11  ;;  %228 = vmatpush.msrb.mxu1 %v594_v13 }
  0x3b   :  { %252 = vmatpush.msrb.mxu2 %v594_v13  ;;  %300 = vmatpush.msrb.mxu0 %v594_v13 }
  0x3c   :  { %276 = vmatpush.msrb.mxu3 %v594_v13  ;;  %229 = vmatpush.msrb.mxu1 %v602_v15 }
  0x3d   :  { %253 = vmatpush.msrb.mxu2 %v602_v15  ;;  %301 = vmatpush.msrb.mxu0 %v602_v15 }
  0x3e   :  { %277 = vmatpush.msrb.mxu3 %v602_v15  ;;  %230 = vmatpush.msrb.mxu1 %v610_v17 }
  0x3f   :  { %254 = vmatpush.msrb.mxu2 %v610_v17  ;;  %302 = vmatpush.msrb.mxu0 %v610_v17 }
  0x40   :  { %278 = vmatpush.msrb.mxu3 %v610_v17  ;;  %231 = vmatpush.msrb.mxu1 %v618_v19 }
  0x41   :  { %255 = vmatpush.msrb.mxu2 %v618_v19  ;;  %303 = vmatpush.msrb.mxu0 %v618_v19 }
  0x42   :  { %279 = vmatpush.msrb.mxu3 %v618_v19  ;;  %232 = vmatpush.msrb.mxu1 %v626_v21 }
  0x43   :  { %256 = vmatpush.msrb.mxu2 %v626_v21  ;;  %304 = vmatpush.msrb.mxu0 %v626_v21 }
  0x44   :  { %280 = vmatpush.msrb.mxu3 %v626_v21  ;;  %233 = vmatpush.msrb.mxu1 %v634_v23 }
  0x45   :  { %257 = vmatpush.msrb.mxu2 %v634_v23  ;;  %305 = vmatpush.msrb.mxu0 %v634_v23 }
  0x46   :  { %281 = vmatpush.msrb.mxu3 %v634_v23  ;;  %234 = vmatpush.msrb.mxu1 %v642_v25 }
  0x47   :  { %258 = vmatpush.msrb.mxu2 %v642_v25  ;;  %306 = vmatpush.msrb.mxu0 %v642_v25 }
  0x48   :  { %282 = vmatpush.msrb.mxu3 %v642_v25  ;;  %235 = vmatpush.msrb.mxu1 %v650_v27 }
  0x49   :  { %259 = vmatpush.msrb.mxu2 %v650_v27  ;;  %307 = vmatpush.msrb.mxu0 %v650_v27 }
  0x4a   :  { %283 = vmatpush.msrb.mxu3 %v650_v27  ;;  %236 = vmatpush.msrb.mxu1 %v658_v29 }
  0x4b   :  { %260 = vmatpush.msrb.mxu2 %v658_v29  ;;  %308 = vmatpush.msrb.mxu0 %v658_v29 }
  0x4c   :  { %284 = vmatpush.msrb.mxu3 %v658_v29  ;;  %237 = vmatpush.msrb.mxu1 %v666_v31 }
  0x4d   :  { %261 = vmatpush.msrb.mxu2 %v666_v31  ;;  %309 = vmatpush.msrb.mxu0 %v666_v31 }
  0x4e   :  { %285 = vmatpush.msrb.mxu3 %v666_v31  ;;  %318 = vmatpush.msra.mxu1 %v554_v2  ;;  %v63_v2 = vld [vmem:[%s799_s0 + $0x38] sm:$0xff] }
  0x4f   :  { %103 = vmatmul.f32.gmra.mxu0 %v57_v34  ;;  %v406_v34 = vld [vmem:[%s804_s5] ss:$0 sm:$0xff] }
  0x50   :  { %319 = vmatpush.msra.mxu1 %v557_v3 }
  0x52   :  { %320 = vmatpush.msra.mxu1 %v562_v5 }
  0x54   :  { %321 = vmatpush.msra.mxu1 %v570_v7 }
  0x56   :  { %322 = vmatpush.msra.mxu1 %v578_v9  ;;  %v354_v9 = vld [vmem:[#allocation6 + $0x70] sm:$0xff] }
  0x57   :  { %106 = vmatmul.f32.gmra.mxu0 %v58_v41 }
  0x58   :  { %323 = vmatpush.msra.mxu1 %v586_v11  ;;  %v353_v11 = vld [vmem:[#allocation6 + $0x68] sm:$0xff] }
  0x5a   :  { %324 = vmatpush.msra.mxu1 %v594_v13  ;;  %v351_v13 = vld [vmem:[#allocation6 + $0x58] sm:$0xff] }
  0x5c   :  { %325 = vmatpush.msra.mxu1 %v602_v15  ;;  %v349_v15 = vld [vmem:[#allocation6 + $0x48] sm:$0xff] }
  0x5e   :  { %326 = vmatpush.msra.mxu1 %v610_v17  ;;  %v348_v17 = vld [vmem:[#allocation6 + $0x40] sm:$0xff] }
  0x5f   :  { %109 = vmatmul.f32.gmra.mxu0 %v59_v47 }
  0x60   :  { %327 = vmatpush.msra.mxu1 %v618_v19  ;;  %v346_v19 = vld [vmem:[#allocation6 + $0x30] sm:$0xff] }
  0x62   :  { %328 = vmatpush.msra.mxu1 %v626_v21 }
  0x64   :  { %329 = vmatpush.msra.mxu1 %v634_v23 }
  0x66   :  { %330 = vmatpush.msra.mxu1 %v642_v25  ;;  %v344_v25 = vld [vmem:[#allocation6 + $0x20] sm:$0xff] }
  0x67   :  { %112 = vmatmul.f32.gmra.mxu0 %v60_v53 }
  0x68   :  { %331 = vmatpush.msra.mxu1 %v650_v27  ;;  %v342_v27 = vld [vmem:[#allocation6 + $0x10] sm:$0xff] }
  0x6a   :  { %332 = vmatpush.msra.mxu1 %v658_v29  ;;  %v340_v29 = vld [vmem:[#allocation6] sm:$0xff] }
  0x6c   :  { %333 = vmatpush.msra.mxu1 %v666_v31 }
  0x6f   :  { %115 = vmatmul.f32.gmra.mxu0 %v61_v59 }
  0x77   :  { %118 = vmatmul.f32.gmra.mxu0 %v62_v60 }
  0x7f   :  { %121 = vmatmul.f32.gmra.mxu0 %v63_v2 }
  0xa9   :  { %v101_v36 = vpop.f32.mrf.mxu0 }
  0xaa   :  { %v167_v37 = vpop.f32.mrf.mxu1  ;;  %v102_v38 = vadd.f32 %v765_v35, %v101_v36 }
  0xac   :  { %v170_v39 = vadd.f32 %v167_v37, %v102_v38 }
  0xae   :  { %407 = vtanh.f32 %v170_v39 }
  0xb4   :  { %v408_v40 = vpop.eup %407 }
  0xb5   :  { %190 = vmatmul.f32.vlgmr.msra.gmra.mxu2 %v408_v40 }
  0xb6   :  { %360 = vmatpush.msra.mxu2 %v355_v8 }
  0xb8   :  { %361 = vmatpush.msra.mxu2 %v354_v9 }
  0xba   :  { %362 = vmatpush.msra.mxu2 %v353_v11 }
  0xbc   :  { %363 = vmatpush.msra.mxu2 %v352_v12 }
  0xbe   :  { %364 = vmatpush.msra.mxu2 %v351_v13 }
  0xc0   :  { %365 = vmatpush.msra.mxu2 %v350_v14 }
  0xc2   :  { %366 = vmatpush.msra.mxu2 %v349_v15 }
  0xc4   :  { %367 = vmatpush.msra.mxu2 %v348_v17 }
  0xc6   :  { %368 = vmatpush.msra.mxu2 %v347_v18 }
  0xc8   :  { %369 = vmatpush.msra.mxu2 %v346_v19 }
  0xca   :  { %370 = vmatpush.msra.mxu2 %v345_v20 }
  0xcc   :  { %v104_v42 = vpop.f32.mrf.mxu0  ;;  %371 = vmatpush.msra.mxu2 %v344_v25 }
  0xcd   :  { %v105_v43 = vadd.f32 %v765_v35, %v104_v42 }
  0xce   :  { %372 = vmatpush.msra.mxu2 %v343_v26 }
  0xd0   :  { %373 = vmatpush.msra.mxu2 %v342_v27 }
  0xd2   :  { %374 = vmatpush.msra.mxu2 %v341_v28 }
  0xd4   :  { %v107_v48 = vpop.f32.mrf.mxu0  ;;  %375 = vmatpush.msra.mxu2 %v340_v29 }
  0xd5   :  { %v108_v49 = vadd.f32 %v765_v35, %v107_v48 }
  0xdc   :  { %v110_v54 = vpop.f32.mrf.mxu0 }
  0xdd   :  { %v111_v55 = vadd.f32 %v765_v35, %v110_v54 }
  0xe4   :  { %v113_v61 = vpop.f32.mrf.mxu0 }
  0xe5   :  { %v114_v62 = vadd.f32 %v765_v35, %v113_v61 }
  0xec   :  { %v116_v3 = vpop.f32.mrf.mxu0 }
  0xed   :  { %v117_v4 = vadd.f32 %v765_v35, %v116_v3 }
  0xf4   :  { %v119_v10 = vpop.f32.mrf.mxu0 }
  0xf5   :  { %v120_v21 = vadd.f32 %v765_v35, %v119_v10 }
  0xfc   :  { %v122_v16 = vpop.f32.mrf.mxu0 }
  0xfd   :  { %v123_v30 = vadd.f32 %v765_v35, %v122_v16 }
 0x138   :  { %v191_v44 = vpop.f32.mrf.mxu2 }
 0x139   :  { %v194_v45 = vadd.f32 %v191_v44, %v105_v43 }
 0x13b   :  { %409 = vtanh.f32 %v194_v45 }
 0x141   :  { %v410_v46 = vpop.eup %409 }
 0x142   :  { %214 = vmatmul.f32.vlgmr.msra.gmra.mxu3 %v410_v46 }
 0x1c5   :  { %v215_v50 = vpop.f32.mrf.mxu3 }
 0x1c6   :  { %v218_v51 = vadd.f32 %v215_v50, %v108_v49 }
 0x1c8   :  { %411 = vtanh.f32 %v218_v51 }
 0x1ce   :  { %v412_v52 = vpop.eup %411 }
 0x1cf   :  { %238 = vmatmul.f32.vlgmr.msrb.gmra.mxu1 %v412_v52 }
 0x24c   :  { %v239_v56 = vpop.f32.mrf.mxu1 }
 0x24d   :  { %v242_v57 = vadd.f32 %v239_v56, %v111_v55 }
 0x24f   :  { %413 = vtanh.f32 %v242_v57 }
 0x255   :  { %v414_v58 = vpop.eup %413 }
 0x256   :  { %262 = vmatmul.f32.vlgmr.msrb.gmra.mxu2 %v414_v58 }
 0x2d9   :  { %v263_v63 = vpop.f32.mrf.mxu2 }
 0x2da   :  { %v266_v0 = vadd.f32 %v263_v63, %v114_v62 }
 0x2dc   :  { %415 = vtanh.f32 %v266_v0 }
 0x2e2   :  { %v416_v1 = vpop.eup %415 }
 0x2e3   :  { %286 = vmatmul.f32.vlgmr.msrb.gmra.mxu3 %v416_v1 }
 0x366   :  { %v287_v5 = vpop.f32.mrf.mxu3 }
 0x367   :  { %v290_v6 = vadd.f32 %v287_v5, %v117_v4 }
 0x369   :  { %417 = vtanh.f32 %v290_v6 }
 0x36f   :  { %v418_v7 = vpop.eup %417 }
 0x370   :  { %310 = vmatmul.f32.vlgmr.msrb.gmra.mxu0 %v418_v7 }
 0x3ed   :  { %v311_v22 = vpop.f32.mrf.mxu0 }
 0x3ee   :  { %v314_v23 = vadd.f32 %v311_v22, %v120_v21 }
 0x3f0   :  { %419 = vtanh.f32 %v314_v23 }
 0x3f6   :  { %v420_v24 = vpop.eup %419 }
 0x3f7   :  { %334 = vmatmul.f32.vlgmr.msra.gmra.mxu1 %v420_v24 }
 0x474   :  { %v335_v31 = vpop.f32.mrf.mxu1 }
 0x475   :  { %v338_v32 = vadd.f32 %v335_v31, %v123_v30 }
 0x477   :  { %421 = vtanh.f32 %v338_v32 }
 0x47d   :  { %v422_v33 = vpop.eup %421 }
 0x47e   :  { %376 = vmatmul.f32.vlgmr.msra.gmra.mxu2 %v422_v33 }
 0x501   :  { %v377_v36 = vpop.f32.mrf.mxu2 }
 0x502   :  { %v378_v37 = vadd.f32 %v406_v34, %v377_v36 }
 0x504   :  { %380 = vst [vmem:[#allocation8] sm:$0xff] %v378_v37 }
 0x505   :  { %391 = dma.vmem_to_hbm [thread:$0]  %s387_s7, 128, %s389_s9, [#allocation5]  }
 0x506   :  { %499 = dma.done.wait [#allocation5], 128  }
 0x507   :  { %500 = vsyncadd [#allocation5], 4294967168 }
 0x508   :  { %396 = vsyncpa [#allocation4], 1 }
 0x509   :  { %397 = vsyncpa [#allocation7], 1 }
 0x50a   :  { %398 = vsyncpa [#allocation5], 1 }

</bundles_post_ra>
